<compile_context>
chip_gen: v7x
topology: tpu7x:2x2x1
jax: 0.10.0
libtpu: 0.0.40
codegen_flags: <defaults>
</compile_context>

<pallas_src>
from typing import NamedTuple, Tuple

import jax
import jax.numpy as jnp
from jax import lax
from jax.experimental import pallas as pl
from jax.experimental.pallas import tpu as pltpu

LANE = 128
SUBLANE = 8


def _round_up(n: int, m: int) -> int:
    return ((n + m - 1) // m) * m


# --------------------------------------------------------------------------------
# One-time parameter preparation (hoisted out of the per-call forward).
# --------------------------------------------------------------------------------
class PreparedParams(NamedTuple):
    emb: jax.Array                   # (V_pad, E_pad) bf16, zero padded
    weights: Tuple[jax.Array, ...]   # (in_pad, out_pad) bf16, zero padded
    biases: Tuple[jax.Array, ...]    # (1, out_pad) f32, zero padded
    vocab_size: int
    out_dim: int


def prepare_params(emb, layers) -> PreparedParams:
    """Pad every parameter to lane-dense shapes and cast weights to bf16, once."""
    V, E = emb.shape
    V_pad = _round_up(V, LANE)       # V is the lane dim of the count matrix
    E_pad = _round_up(E, LANE)
    emb_p = jnp.zeros((V_pad, E_pad), jnp.bfloat16)
    emb_p = emb_p.at[:V, :E].set(emb.astype(jnp.bfloat16))

    Ws, bs = [], []
    prev_pad = E_pad
    for (W, b) in layers:
        din, dout = W.shape
        dout_pad = _round_up(dout, LANE)
        Wp = jnp.zeros((prev_pad, dout_pad), jnp.bfloat16)
        Wp = Wp.at[:din, :dout].set(W.astype(jnp.bfloat16))
        bp = jnp.zeros((1, dout_pad), jnp.float32).at[:, :dout].set(b.astype(jnp.float32))
        Ws.append(Wp)
        bs.append(bp)
        prev_pad = dout_pad

    return PreparedParams(emb_p, tuple(Ws), tuple(bs), V, layers[-1][0].shape[1])


# --------------------------------------------------------------------------------
# Kernel bodies
# --------------------------------------------------------------------------------
def _mlp_stack(x, param_refs, n_hidden):
    """Linear(+ReLU) stack: bf16 operands on the MXU, f32 accumulation."""
    n_layers = n_hidden + 1
    for i in range(n_layers):
        w = param_refs[2 * i][...]           # (in_pad, out_pad) bf16
        b = param_refs[2 * i + 1][...]       # (1, out_pad) f32
        x = jnp.dot(x.astype(jnp.bfloat16), w,
                    preferred_element_type=jnp.float32) + b
        if i < n_hidden:                     # ReLU on hidden layers only
            x = jnp.maximum(x, 0.0)
    return x


def _make_vmem_kernel(bm: int, S: int, V_pad: int, E_pad: int, n_hidden: int):
    """Small-vocab path: VMEM-resident table, gather+mean via a count matmul."""
    inv_s = 1.0 / float(S)
    n_layers = n_hidden + 1

    def kernel(ids_ref, emb_ref, *refs):
        param_refs = refs[: 2 * n_layers]
        out_ref = refs[2 * n_layers]

        ids_blk = ids_ref[...]               # (bm, S) int32 tile
        table = emb_ref[...]                 # (V_pad, E_pad) bf16, resident

        # counts[r, v] = #{s : ids[r, s] == v}; built with S aligned VPU passes
        # so temporaries stay bounded at (bm, V_pad).
        iota_v = lax.broadcasted_iota(jnp.int32, (bm, V_pad), 1)
        counts = jnp.zeros((bm, V_pad), jnp.float32)
        for s in range(S):                   # S is small and static
            counts = counts + (iota_v == ids_blk[:, s:s + 1]).astype(jnp.float32)

        # mean embedding = (counts / S) @ table  -- one MXU matmul, zero DMAs.
        x = jnp.dot(counts.astype(jnp.bfloat16), table,
                    preferred_element_type=jnp.float32) * inv_s

        x = _mlp_stack(x, param_refs, n_hidden)
        out_ref[...] = x.astype(out_ref.dtype)

    return kernel


def _make_hbm_kernel(bm: int, S: int, E_pad: int, n_hidden: int):
    """Large-vocab fallback: manual DMA gather of bm*S rows from the HBM table."""
    inv_s = 1.0 / float(S)
    n_layers = n_hidden + 1

    def kernel(ids_ref, emb_hbm, *refs):
        param_refs = refs[: 2 * n_layers]
        out_ref = refs[2 * n_layers]
        buf = refs[2 * n_layers + 1]         # VMEM (S, bm, E_pad) bf16, slab layout
        sems = refs[2 * n_layers + 2]        # DMA semaphores (2, S): small ring

        g = pl.program_id(0)
        base = g * (bm * S)

        def issue(r, slot):
            # ids come from SMEM scalar prefetch; read before any .wait()
            for s in range(S):
                tok = ids_ref[base + r * S + s]
                pltpu.make_async_copy(
                    emb_hbm.at[pl.ds(tok, 1)],        # (1, E_pad) HBM row
                    buf.at[s, pl.ds(r, 1)],           # (1, E_pad) VMEM slab slot
                    sems.at[slot, s]).start()

        issue(0, 0)

        def row_body(r, carry):
            slot = r % 2
            # prefetch next row's S embeddings before waiting on this row's
            @pl.when(r + 1 < bm)
            def _():
                issue(r + 1, 1 - slot)
            for s in range(S):
                pltpu.make_async_copy(
                    emb_hbm.at[pl.ds(0, 1)],
                    buf.at[s, pl.ds(r, 1)],
                    sems.at[slot, s]).wait()
            return carry

        lax.fori_loop(0, bm, row_body, 0, unroll=False)
        # TODO(synk): double-buffer `buf` across grid steps so step g+1's gather
        # hides behind step g's matmuls (review item 3).

        # mean over the sequence: S aligned slab adds, no reshape / relayout.
        acc = jnp.zeros((bm, E_pad), jnp.float32)
        for s in range(S):
            acc = acc + buf[s].astype(jnp.float32)
        x = acc * inv_s

        x = _mlp_stack(x, param_refs, n_hidden)
        out_ref[...] = x.astype(out_ref.dtype)

    return kernel


# --------------------------------------------------------------------------------
# Wrapper
# --------------------------------------------------------------------------------
def mlp_forward(ids, params: PreparedParams, *, bm: int = 128,
                vmem_table_max_bytes: int = 4 * 1024 * 1024):
    """ids: (B, S) integer token ids; params: output of prepare_params()."""
    B, S = ids.shape
    V = params.vocab_size
    V_pad, E_pad = params.emb.shape
    out_pad = params.biases[-1].shape[1]
    n_hidden = len(params.weights) - 1

    # Batch tile: large enough to fill the MXU M dimension; clamp only for tiny B.
    bm = min(bm, _round_up(B, SUBLANE))
    B_pad = _round_up(B, bm)
    grid = (B_pad // bm,)

    # Clip ids (PyTorch nn.Embedding would raise on OOB; avoid an OOB gather),
    # pad the batch.  This is the only per-call preprocessing left.
    ids32 = jnp.clip(ids.astype(jnp.int32), 0, V - 1)
    ids_p = jnp.zeros((B_pad, S), jnp.int32).at[:B, :].set(ids32)

    wb = []
    for W, b in zip(params.weights, params.biases):
        wb += [W, b]

    # Single-buffer constant blocks only when they are big enough to matter for
    # VMEM (critical on v7x's 64 MiB); small demo sizes keep the default pipeline.
    const_bytes = (params.emb.size * 2
                   + sum(w.size * 2 for w in params.weights)
                   + sum(b.size * 4 for b in params.biases))
    single_buffer = const_bytes > (8 * 1024 * 1024)

    def _const_spec(shape):
        if single_buffer:
            return pl.BlockSpec(shape, lambda *_: (0, 0), pipeline_mode=pl.Buffered(1))
        return pl.BlockSpec(shape, lambda *_: (0, 0))

    param_specs = []
    for W, b in zip(params.weights, params.biases):
        param_specs.append(_const_spec(W.shape))
        param_specs.append(_const_spec(b.shape))

    table_bytes = params.emb.size * params.emb.dtype.itemsize
    use_vmem_table = table_bytes <= vmem_table_max_bytes

    # Rough per-step VMEM footprint -> explicit scoped-vmem limit (review item 6).
    buffering = 1 if single_buffer else 2
    est = (buffering * const_bytes
           + 2 * (bm * S * 4 + bm * out_pad * 4)           # ids + out tiles
           + bm * (V_pad + 4 * E_pad) * 4                  # in-kernel temporaries
           + (0 if use_vmem_table else 2 * S * bm * E_pad * 2))
    vmem_limit = int(min(max(2 * est, 16 * 1024 * 1024), 100 * 1024 * 1024))
    cparams = pltpu.CompilerParams(dimension_semantics=("parallel",),
                                   vmem_limit_bytes=vmem_limit)

    out_shape = jax.ShapeDtypeStruct((B_pad, out_pad), jnp.float32)

    if use_vmem_table:
        kernel = _make_vmem_kernel(bm, S, V_pad, E_pad, n_hidden)
        out = pl.pallas_call(
            kernel,
            out_shape=out_shape,
            grid=grid,
            in_specs=[pl.BlockSpec((bm, S), lambda g: (g, 0)),      # ids tile (VMEM)
                      _const_spec((V_pad, E_pad))] + param_specs,   # resident table
            out_specs=pl.BlockSpec((bm, out_pad), lambda g: (g, 0)),
            compiler_params=cparams,
        )(ids_p, params.emb, *wb)
    else:
        kernel = _make_hbm_kernel(bm, S, E_pad, n_hidden)
        out = pl.pallas_call(
            kernel,
            out_shape=out_shape,
            grid_spec=pltpu.PrefetchScalarGridSpec(
                num_scalar_prefetch=1,                              # flat ids -> SMEM
                grid=grid,
                in_specs=[pl.BlockSpec(memory_space=pl.ANY)] + param_specs,
                out_specs=pl.BlockSpec((bm, out_pad), lambda g, ids: (g, 0)),
                scratch_shapes=[
                    pltpu.VMEM((S, bm, E_pad), jnp.bfloat16),       # gathered slabs
                    pltpu.SemaphoreType.DMA((2, S)),                # semaphore ring
                ]),
            compiler_params=cparams,
        )(ids_p.reshape(-1), params.emb, *wb)

    return out[:B, :params.out_dim]


# --------------------------------------------------------------------------------
# Pure-JAX reference (mirrors the kernel's bf16 parameter quantization)
# --------------------------------------------------------------------------------
def reference_forward(ids, emb, layers):
    V = emb.shape[0]
    emb_bf = emb.astype(jnp.bfloat16).astype(jnp.float32)
    x = emb_bf[jnp.clip(ids, 0, V - 1)]          # nn.Embedding
    x = x.mean(axis=1)                           # x.mean(dim=1)
    for i, (W, b) in enumerate(layers):
        Wf = W.astype(jnp.bfloat16).astype(jnp.float32)
        x = x.astype(jnp.bfloat16).astype(jnp.float32) @ Wf + b
        if i < len(layers) - 1:
            x = jnp.maximum(x, 0.0)              # ReLU on hidden layers only
    return x


def init_params(key, vocab_size, embedding_dim, hidden_dims, output_dim):
    """Deterministic init; shapes match the PyTorch module (W stored as (in, out))."""
    keys = jax.random.split(key, 1 + 2 * (len(hidden_dims) + 1))
    emb = jax.random.normal(keys[0], (vocab_size, embedding_dim), jnp.float32)

    layers = []
    prev = embedding_dim
    dims = list(hidden_dims) + [output_dim]
    for i, d in enumerate(dims):
        bound = 1.0 / float(jnp.sqrt(prev))
        W = jax.random.uniform(keys[1 + 2 * i], (prev, d), jnp.float32, -bound, bound)
        b = jax.random.uniform(keys[2 + 2 * i], (d,), jnp.float32, -bound, bound)
        layers.append((W, b))
        prev = d
    return emb, layers


if __name__ == "__main__":
    vocab_size = 64
    embedding_dim = 32
    hidden_dims = [32, 32]
    output_dim = 16
    batch = 2
    seq = 8

    key = jax.random.PRNGKey(0)
    k_ids, k_params = jax.random.split(key)

    ids = jax.random.randint(k_ids, (batch, seq), 0, vocab_size, dtype=jnp.int32)
    emb, layers = init_params(k_params, vocab_size, embedding_dim, hidden_dims, output_dim)

    prepared = prepare_params(emb, layers)       # one-time pad/cast (hoisted)
    out = mlp_forward(ids, prepared)
    out = jax.block_until_ready(out)

    ref = reference_forward(ids, emb, layers)
    assert out.shape == (batch, output_dim), out.shape
    max_diff = float(jnp.max(jnp.abs(out - ref)))
    assert jnp.allclose(out, ref, rtol=2e-2, atol=2e-2), (
        f"mismatch vs reference, max |diff| = {max_diff}")

    print("KERNEL_OK")
</pallas_src>

<mosaic_0001>
module attributes {stable_mosaic.version = 11 : i64} {
  func.func @kernel(%arg0: i32, %arg1: memref<8x8xi32, #tpu.memory_space<vmem>>, %arg2: memref<128x128xbf16, #tpu.memory_space<vmem>>, %arg3: memref<128x128xbf16, #tpu.memory_space<vmem>>, %arg4: memref<1x128xf32, #tpu.memory_space<vmem>>, %arg5: memref<128x128xbf16, #tpu.memory_space<vmem>>, %arg6: memref<1x128xf32, #tpu.memory_space<vmem>>, %arg7: memref<128x128xbf16, #tpu.memory_space<vmem>>, %arg8: memref<1x128xf32, #tpu.memory_space<vmem>>, %arg9: memref<8x128xf32, #tpu.memory_space<vmem>>) attributes {dimension_semantics = [#tpu.dimension_semantics<parallel>], iteration_bounds = array<i64: 1>, scalar_prefetch = 0 : i64, scratch_operands = 0 : i64, tpu.core_type = #tpu.core_type<tc>, window_params = [{transform_indices = @transform_0, window_bounds = array<i64: 8, 8>}, {pipeline_mode = #tpu.pipeline_mode<synchronous>, transform_indices = @transform_1, window_bounds = array<i64: 128, 128>}, {pipeline_mode = #tpu.pipeline_mode<synchronous>, transform_indices = @transform_2, window_bounds = array<i64: 128, 128>}, {pipeline_mode = #tpu.pipeline_mode<synchronous>, transform_indices = @transform_3, window_bounds = array<i64: 1, 128>}, {pipeline_mode = #tpu.pipeline_mode<synchronous>, transform_indices = @transform_4, window_bounds = array<i64: 128, 128>}, {pipeline_mode = #tpu.pipeline_mode<synchronous>, transform_indices = @transform_5, window_bounds = array<i64: 1, 128>}, {pipeline_mode = #tpu.pipeline_mode<synchronous>, transform_indices = @transform_6, window_bounds = array<i64: 128, 128>}, {pipeline_mode = #tpu.pipeline_mode<synchronous>, transform_indices = @transform_7, window_bounds = array<i64: 1, 128>}, {transform_indices = @transform_8, window_bounds = array<i64: 8, 128>}]} {
    %c0 = arith.constant 0 : index
    %c0_0 = arith.constant 0 : index
    %0 = vector.load %arg1[%c0, %c0_0] : memref<8x8xi32, #tpu.memory_space<vmem>>, vector<8x8xi32>
    %c0_1 = arith.constant 0 : index
    %c0_2 = arith.constant 0 : index
    %1 = vector.load %arg2[%c0_1, %c0_2] : memref<128x128xbf16, #tpu.memory_space<vmem>>, vector<128x128xbf16>
    %2 = tpu.iota {dimensions = array<i32: 1>} : vector<8x128xi32>
    %cst = arith.constant 0.000000e+00 : f32
    %3 = vector.broadcast %cst : f32 to vector<8x128xf32>
    %4 = vector.extract_strided_slice %0 {offsets = [0, 0], sizes = [8, 1], strides = [1, 1]} : vector<8x8xi32> to vector<8x1xi32>
    %5 = vector.broadcast %4 : vector<8x1xi32> to vector<8x128xi32>
    %6 = arith.cmpi eq, %2, %5 : vector<8x128xi32>
    %7 = arith.extui %6 : vector<8x128xi1> to vector<8x128xi32>
    %8 = arith.sitofp %7 : vector<8x128xi32> to vector<8x128xf32>
    %9 = arith.addf %3, %8 : vector<8x128xf32>
    %10 = vector.extract_strided_slice %0 {offsets = [0, 1], sizes = [8, 1], strides = [1, 1]} : vector<8x8xi32> to vector<8x1xi32>
    %11 = vector.broadcast %10 : vector<8x1xi32> to vector<8x128xi32>
    %12 = arith.cmpi eq, %2, %11 : vector<8x128xi32>
    %13 = arith.extui %12 : vector<8x128xi1> to vector<8x128xi32>
    %14 = arith.sitofp %13 : vector<8x128xi32> to vector<8x128xf32>
    %15 = arith.addf %9, %14 : vector<8x128xf32>
    %16 = vector.extract_strided_slice %0 {offsets = [0, 2], sizes = [8, 1], strides = [1, 1]} : vector<8x8xi32> to vector<8x1xi32>
    %17 = vector.broadcast %16 : vector<8x1xi32> to vector<8x128xi32>
    %18 = arith.cmpi eq, %2, %17 : vector<8x128xi32>
    %19 = arith.extui %18 : vector<8x128xi1> to vector<8x128xi32>
    %20 = arith.sitofp %19 : vector<8x128xi32> to vector<8x128xf32>
    %21 = arith.addf %15, %20 : vector<8x128xf32>
    %22 = vector.extract_strided_slice %0 {offsets = [0, 3], sizes = [8, 1], strides = [1, 1]} : vector<8x8xi32> to vector<8x1xi32>
    %23 = vector.broadcast %22 : vector<8x1xi32> to vector<8x128xi32>
    %24 = arith.cmpi eq, %2, %23 : vector<8x128xi32>
    %25 = arith.extui %24 : vector<8x128xi1> to vector<8x128xi32>
    %26 = arith.sitofp %25 : vector<8x128xi32> to vector<8x128xf32>
    %27 = arith.addf %21, %26 : vector<8x128xf32>
    %28 = vector.extract_strided_slice %0 {offsets = [0, 4], sizes = [8, 1], strides = [1, 1]} : vector<8x8xi32> to vector<8x1xi32>
    %29 = vector.broadcast %28 : vector<8x1xi32> to vector<8x128xi32>
    %30 = arith.cmpi eq, %2, %29 : vector<8x128xi32>
    %31 = arith.extui %30 : vector<8x128xi1> to vector<8x128xi32>
    %32 = arith.sitofp %31 : vector<8x128xi32> to vector<8x128xf32>
    %33 = arith.addf %27, %32 : vector<8x128xf32>
    %34 = vector.extract_strided_slice %0 {offsets = [0, 5], sizes = [8, 1], strides = [1, 1]} : vector<8x8xi32> to vector<8x1xi32>
    %35 = vector.broadcast %34 : vector<8x1xi32> to vector<8x128xi32>
    %36 = arith.cmpi eq, %2, %35 : vector<8x128xi32>
    %37 = arith.extui %36 : vector<8x128xi1> to vector<8x128xi32>
    %38 = arith.sitofp %37 : vector<8x128xi32> to vector<8x128xf32>
    %39 = arith.addf %33, %38 : vector<8x128xf32>
    %40 = vector.extract_strided_slice %0 {offsets = [0, 6], sizes = [8, 1], strides = [1, 1]} : vector<8x8xi32> to vector<8x1xi32>
    %41 = vector.broadcast %40 : vector<8x1xi32> to vector<8x128xi32>
    %42 = arith.cmpi eq, %2, %41 : vector<8x128xi32>
    %43 = arith.extui %42 : vector<8x128xi1> to vector<8x128xi32>
    %44 = arith.sitofp %43 : vector<8x128xi32> to vector<8x128xf32>
    %45 = arith.addf %39, %44 : vector<8x128xf32>
    %46 = vector.extract_strided_slice %0 {offsets = [0, 7], sizes = [8, 1], strides = [1, 1]} : vector<8x8xi32> to vector<8x1xi32>
    %47 = vector.broadcast %46 : vector<8x1xi32> to vector<8x128xi32>
    %48 = arith.cmpi eq, %2, %47 : vector<8x128xi32>
    %49 = arith.extui %48 : vector<8x128xi1> to vector<8x128xi32>
    %50 = arith.sitofp %49 : vector<8x128xi32> to vector<8x128xf32>
    %51 = arith.addf %45, %50 : vector<8x128xf32>
    %52 = arith.truncf %51 : vector<8x128xf32> to vector<8x128xbf16>
    %cst_3 = arith.constant dense<0.000000e+00> : vector<8x128xf32>
    %53 = tpu.matmul %52, %1, %cst_3 {dimension_numbers = #tpu.dot_dimension_numbers<[1], [0], [0], [1], [0, 0, 1, 1], [], []>} : vector<8x128xbf16>, vector<128x128xbf16>, vector<8x128xf32> -> vector<8x128xf32>
    %cst_4 = arith.constant 1.250000e-01 : f32
    %54 = vector.broadcast %cst_4 : f32 to vector<8x128xf32>
    %55 = arith.mulf %53, %54 : vector<8x128xf32>
    %c0_5 = arith.constant 0 : index
    %c0_6 = arith.constant 0 : index
    %56 = vector.load %arg3[%c0_5, %c0_6] : memref<128x128xbf16, #tpu.memory_space<vmem>>, vector<128x128xbf16>
    %c0_7 = arith.constant 0 : index
    %c0_8 = arith.constant 0 : index
    %57 = vector.load %arg4[%c0_7, %c0_8] : memref<1x128xf32, #tpu.memory_space<vmem>>, vector<1x128xf32>
    %58 = arith.truncf %55 : vector<8x128xf32> to vector<8x128xbf16>
    %cst_9 = arith.constant dense<0.000000e+00> : vector<8x128xf32>
    %59 = tpu.matmul %58, %56, %cst_9 {dimension_numbers = #tpu.dot_dimension_numbers<[1], [0], [0], [1], [0, 0, 1, 1], [], []>} : vector<8x128xbf16>, vector<128x128xbf16>, vector<8x128xf32> -> vector<8x128xf32>
    %60 = vector.broadcast %57 : vector<1x128xf32> to vector<8x128xf32>
    %61 = arith.addf %59, %60 : vector<8x128xf32>
    %cst_10 = arith.constant 0.000000e+00 : f32
    %62 = vector.broadcast %cst_10 : f32 to vector<8x128xf32>
    %63 = arith.maximumf %61, %62 : vector<8x128xf32>
    %c0_11 = arith.constant 0 : index
    %c0_12 = arith.constant 0 : index
    %64 = vector.load %arg5[%c0_11, %c0_12] : memref<128x128xbf16, #tpu.memory_space<vmem>>, vector<128x128xbf16>
    %c0_13 = arith.constant 0 : index
    %c0_14 = arith.constant 0 : index
    %65 = vector.load %arg6[%c0_13, %c0_14] : memref<1x128xf32, #tpu.memory_space<vmem>>, vector<1x128xf32>
    %66 = arith.truncf %63 : vector<8x128xf32> to vector<8x128xbf16>
    %cst_15 = arith.constant dense<0.000000e+00> : vector<8x128xf32>
    %67 = tpu.matmul %66, %64, %cst_15 {dimension_numbers = #tpu.dot_dimension_numbers<[1], [0], [0], [1], [0, 0, 1, 1], [], []>} : vector<8x128xbf16>, vector<128x128xbf16>, vector<8x128xf32> -> vector<8x128xf32>
    %68 = vector.broadcast %65 : vector<1x128xf32> to vector<8x128xf32>
    %69 = arith.addf %67, %68 : vector<8x128xf32>
    %cst_16 = arith.constant 0.000000e+00 : f32
    %70 = vector.broadcast %cst_16 : f32 to vector<8x128xf32>
    %71 = arith.maximumf %69, %70 : vector<8x128xf32>
    %c0_17 = arith.constant 0 : index
    %c0_18 = arith.constant 0 : index
    %72 = vector.load %arg7[%c0_17, %c0_18] : memref<128x128xbf16, #tpu.memory_space<vmem>>, vector<128x128xbf16>
    %c0_19 = arith.constant 0 : index
    %c0_20 = arith.constant 0 : index
    %73 = vector.load %arg8[%c0_19, %c0_20] : memref<1x128xf32, #tpu.memory_space<vmem>>, vector<1x128xf32>
    %74 = arith.truncf %71 : vector<8x128xf32> to vector<8x128xbf16>
    %cst_21 = arith.constant dense<0.000000e+00> : vector<8x128xf32>
    %75 = tpu.matmul %74, %72, %cst_21 {dimension_numbers = #tpu.dot_dimension_numbers<[1], [0], [0], [1], [0, 0, 1, 1], [], []>} : vector<8x128xbf16>, vector<128x128xbf16>, vector<8x128xf32> -> vector<8x128xf32>
    %76 = vector.broadcast %73 : vector<1x128xf32> to vector<8x128xf32>
    %77 = arith.addf %75, %76 : vector<8x128xf32>
    %c0_22 = arith.constant 0 : index
    %c0_23 = arith.constant 0 : index
    %78 = vector.load %arg9[%c0_22, %c0_23] : memref<8x128xf32, #tpu.memory_space<vmem>>, vector<8x128xf32>
    tpu.vector_store %arg9[%c0_22, %c0_23], %77 {strides = array<i32>} : memref<8x128xf32, #tpu.memory_space<vmem>>, vector<8x128xf32>,
    return
  }
  func.func @transform_0(%arg0: i32) -> (i32, i32) {
    %c0_i32 = arith.constant 0 : i32
    %c0_i32_0 = arith.constant 0 : i32
    return %arg0, %c0_i32 : i32, i32
  }
  func.func @transform_1(%arg0: i32) -> (i32, i32) {
    %c0_i32 = arith.constant 0 : i32
    %c0_i32_0 = arith.constant 0 : i32
    %c0_i32_1 = arith.constant 0 : i32
    return %c0_i32, %c0_i32_0 : i32, i32
  }
  func.func @transform_2(%arg0: i32) -> (i32, i32) {
    %c0_i32 = arith.constant 0 : i32
    %c0_i32_0 = arith.constant 0 : i32
    %c0_i32_1 = arith.constant 0 : i32
    return %c0_i32, %c0_i32_0 : i32, i32
  }
  func.func @transform_3(%arg0: i32) -> (i32, i32) {
    %c0_i32 = arith.constant 0 : i32
    %c0_i32_0 = arith.constant 0 : i32
    %c0_i32_1 = arith.constant 0 : i32
    return %c0_i32, %c0_i32_0 : i32, i32
  }
  func.func @transform_4(%arg0: i32) -> (i32, i32) {
    %c0_i32 = arith.constant 0 : i32
    %c0_i32_0 = arith.constant 0 : i32
    %c0_i32_1 = arith.constant 0 : i32
    return %c0_i32, %c0_i32_0 : i32, i32
  }
  func.func @transform_5(%arg0: i32) -> (i32, i32) {
    %c0_i32 = arith.constant 0 : i32
    %c0_i32_0 = arith.constant 0 : i32
    %c0_i32_1 = arith.constant 0 : i32
    return %c0_i32, %c0_i32_0 : i32, i32
  }
  func.func @transform_6(%arg0: i32) -> (i32, i32) {
    %c0_i32 = arith.constant 0 : i32
    %c0_i32_0 = arith.constant 0 : i32
    %c0_i32_1 = arith.constant 0 : i32
    return %c0_i32, %c0_i32_0 : i32, i32
  }
  func.func @transform_7(%arg0: i32) -> (i32, i32) {
    %c0_i32 = arith.constant 0 : i32
    %c0_i32_0 = arith.constant 0 : i32
    %c0_i32_1 = arith.constant 0 : i32
    return %c0_i32, %c0_i32_0 : i32, i32
  }
  func.func @transform_8(%arg0: i32) -> (i32, i32) {
    %c0_i32 = arith.constant 0 : i32
    %c0_i32_0 = arith.constant 0 : i32
    return %arg0, %c0_i32 : i32, i32
  }
}

</mosaic_0001>

<bundles_post_ra>
// kernel: tpu_custom_call.1
= control target key start
LH: loop header
LB: loop body
LE: loop exit
PB: predicated region body
PF: predicated region fallthrough
CT: control target
= control target key end

     0   :  { %13 = vsyncpa [#allocation3], 0  ;;  %s1180_s0 = inlined_call_operand.hbm [shape: s32[8,8], index: 0, kind: input, shape index: {}]   ;;  %s1181_s1 = inlined_call_operand.hbm [shape: bf16[128,128], index: 1, kind: input, shape index: {}]   ;;  %s1182_s2 = inlined_call_operand.hbm [shape: bf16[128,128], index: 2, kind: input, shape index: {}]   ;;  %s1183_s3 = inlined_call_operand.vmem [shape: f32[1,128], index: 3, kind: input, shape index: {}]   ;;  %s1184_s4 = inlined_call_operand.hbm [shape: bf16[128,128], index: 4, kind: input, shape index: {}]   ;;  %s1185_s5 = inlined_call_operand.vmem [shape: f32[1,128], index: 5, kind: input, shape index: {}]   ;;  %s1186_s6 = inlined_call_operand.hbm [shape: bf16[128,128], index: 6, kind: input, shape index: {}]   ;;  %s1187_s7 = inlined_call_operand.vmem [shape: f32[1,128], index: 7, kind: input, shape index: {}]   ;;  %s1188_s8 = inlined_call_operand.hbm [shape: f32[8,128], index: 8, kind: output, shape index: {}]  }
   0x1   :  { %14 = vsyncpa [#allocation6], 0 }
   0x2   :  { %15 = vsyncpa [#allocation9], 0 }
   0x3   :  { %16 = vsyncpa [#allocation4], 0  ;;  %s976_s27 = smov [#allocation5]   ;;  %s836_s9 = scalar_lea.hbm %s1181_s1, 1024 }
   0x4   :  { %s32_s28 = sshll.u32 %s976_s27, 4  ;;  %p837_p0 = scmp.ne.s32.totalorder %s1181_s1, %s836_s9  ;;  %s33_s28 = int_to_ptr.vmem [resolvable:$true] %s32_s28 }
   0x5   :  { %p840_p1 = scmp.lt.u32.totalorder %s836_s9, %s1181_s1 }
   0x7   :  { %p842_p2 = pnand %p840_p1, %p837_p0 }
   0x9   :  { %845 = shalt.err (!%p842_p2)
}
   0xa   :  { %s846_s14 = scalar_lea.vmem %s33_s28, 1024  ;;  %p851_p4 = scmp.lt.s32.totalorder %s33_s28, %s33_s28 }
   0xb   :  { %p847_p3 = scmp.ne.s32.totalorder %s33_s28, %s846_s14  ;;  %p852_p5 = scmp.lt.s32.totalorder %s846_s14, %s846_s14 }
   0xd   :  { %p853_p6 = por %p852_p5, %p851_p4 }
   0xf   :  { %p854_p7 = pnand %p853_p6, %p847_p3 }
  0x11   :  { %857 = shalt.err (!%p854_p7)
}
  0x12   :  { %s977_s15 = smov 64   ;;  %s978_s16 = smov 4  }
  0x13   :  { %38 = dma.hbm_to_vmem [thread:$0]  %s1181_s1, 1024, %s33_s28, [#allocation6], %s977_s15, %s977_s15, %s978_s16  }
  0x14   :  { %s979_s19 = smov [#allocation8]   ;;  %s980_s21 = smov [#allocation2]  }
  0x15   :  { %s58_s20 = sshll.u32 %s979_s19, 4  ;;  %s23_s22 = sshll.u32 %s980_s21, 4  ;;  %s59_s20 = int_to_ptr.vmem [resolvable:$true] %s58_s20  ;;  %s24_s22 = int_to_ptr.vmem [resolvable:$true] %s23_s22 }
  0x16   :  { %s858_s25 = scalar_lea.hbm %s1184_s4, 1024 }
  0x17   :  { %p859_p8 = scmp.ne.s32.totalorder %s1184_s4, %s858_s25  ;;  %p862_p9 = scmp.lt.u32.totalorder %s858_s25, %s1184_s4 }
  0x19   :  { %p864_p10 = pnand %p862_p9, %p859_p8 }
  0x1b   :  { %867 = shalt.err (!%p864_p10)
}
  0x1c   :  { %s868_s1 = scalar_lea.vmem %s59_s20, 1024  ;;  %p873_p12 = scmp.lt.s32.totalorder %s59_s20, %s59_s20 }
  0x1d   :  { %p869_p11 = scmp.ne.s32.totalorder %s59_s20, %s868_s1  ;;  %p874_p13 = scmp.lt.s32.totalorder %s868_s1, %s868_s1 }
  0x1f   :  { %p875_p0 = por %p874_p13, %p873_p12 }
  0x21   :  { %p876_p1 = pnand %p875_p0, %p869_p11 }
  0x23   :  { %879 = shalt.err (!%p876_p1)
}
  0x24   :  { %64 = dma.hbm_to_vmem [thread:$0]  %s1184_s4, 1024, %s59_s20, [#allocation9], %s977_s15, %s977_s15, %s978_s16  }
  0x25   :  { %s880_s12 = scalar_lea.hbm %s1180_s0, 128 }
  0x26   :  { %p881_p2 = scmp.ne.s32.totalorder %s1180_s0, %s880_s12  ;;  %p884_p3 = scmp.lt.u32.totalorder %s880_s12, %s1180_s0 }
  0x28   :  { %p886_p4 = pnand %p884_p3, %p881_p2 }
  0x2a   :  { %889 = shalt.err (!%p886_p4)
}
  0x2b   :  { %s890_s19 = scalar_lea.vmem %s24_s22, 128  ;;  %p895_p6 = scmp.lt.s32.totalorder %s24_s22, %s24_s22 }
  0x2c   :  { %p891_p5 = scmp.ne.s32.totalorder %s24_s22, %s890_s19  ;;  %p896_p7 = scmp.lt.s32.totalorder %s890_s19, %s890_s19 }
  0x2e   :  { %p897_p8 = por %p896_p7, %p895_p6 }
  0x30   :  { %p898_p9 = pnand %p897_p8, %p891_p5 }
  0x32   :  { %901 = shalt.err (!%p898_p9)
}
  0x33   :  { %26 = dma.hbm_to_vmem [thread:$0]  %s1180_s0, 128, %s24_s22, [#allocation3]  }
  0x34   :  { %s981_s21 = smov [#allocation7]   ;;  %s982_s24 = smov [#allocation10]  }
  0x35   :  { %s44_s23 = sshll.u32 %s981_s21, 4  ;;  %s72_s25 = sshll.u32 %s982_s24, 4  ;;  %s45_s23 = int_to_ptr.vmem [resolvable:$true] %s44_s23  ;;  %s73_s25 = int_to_ptr.vmem [resolvable:$true] %s72_s25 }
  0x36   :  { %s902_s29 = scalar_lea.hbm %s1182_s2, 1024 }
  0x37   :  { %p903_p10 = scmp.ne.s32.totalorder %s1182_s2, %s902_s29  ;;  %p906_p11 = scmp.lt.u32.totalorder %s902_s29, %s1182_s2 }
  0x39   :  { %p908_p12 = pnand %p906_p11, %p903_p10 }
  0x3b   :  { %911 = shalt.err (!%p908_p12)
}
  0x3c   :  { %s912_s0 = scalar_lea.vmem %s45_s23, 1024  ;;  %p917_p0 = scmp.lt.s32.totalorder %s45_s23, %s45_s23 }
  0x3d   :  { %p913_p13 = scmp.ne.s32.totalorder %s45_s23, %s912_s0  ;;  %p918_p1 = scmp.lt.s32.totalorder %s912_s0, %s912_s0 }
  0x3f   :  { %p919_p2 = por %p918_p1, %p917_p0 }
  0x41   :  { %p920_p3 = pnand %p919_p2, %p913_p13 }
  0x43   :  { %923 = shalt.err (!%p920_p3)
}
  0x44   :  { %50 = dma.hbm_to_vmem [thread:$0]  %s1182_s2, 1024, %s45_s23, [#allocation6], %s977_s15, %s977_s15, %s978_s16  }
  0x45   :  { %s924_s13 = scalar_lea.hbm %s1186_s6, 1024 }
  0x46   :  { %p925_p4 = scmp.ne.s32.totalorder %s1186_s6, %s924_s13  ;;  %p928_p5 = scmp.lt.u32.totalorder %s924_s13, %s1186_s6 }
  0x48   :  { %p930_p6 = pnand %p928_p5, %p925_p4 }
  0x4a   :  { %933 = shalt.err (!%p930_p6)
}
  0x4b   :  { %s934_s4 = scalar_lea.vmem %s73_s25, 1024  ;;  %p939_p8 = scmp.lt.s32.totalorder %s73_s25, %s73_s25 }
  0x4c   :  { %p935_p7 = scmp.ne.s32.totalorder %s73_s25, %s934_s4  ;;  %p940_p9 = scmp.lt.s32.totalorder %s934_s4, %s934_s4 }
  0x4e   :  { %p941_p10 = por %p940_p9, %p939_p8 }
  0x50   :  { %p942_p11 = pnand %p941_p10, %p935_p7 }
  0x52   :  { %945 = shalt.err (!%p942_p11)
}
  0x53   :  { %78 = dma.hbm_to_vmem [thread:$0]  %s1186_s6, 1024, %s73_s25, [#allocation9], %s977_s15, %s977_s15, %s978_s16  }
  0x54   :  { %968 = dma.done.wait [#allocation3], 128  }
  0x55   :  { %969 = vsyncadd [#allocation3], 4294967168 }
  0x56   :  { %970 = dma.done.wait [#allocation6], 2048  }
  0x57   :  { %971 = vsyncadd [#allocation6], 4294965248 }
  0x58   :  { %972 = dma.done.wait [#allocation9], 2048  }
  0x59   :  { %973 = vsyncadd [#allocation9], 4294965248  ;;  %v983_v0 = vmov 2   ;;  %v984_v1 = vmov 0   ;;  %v985_v2 = vmov 0.0   ;;  %v97_v3 = vld [vmem:[#allocation2] sm:$0xff]  ;;  %v114_v25 = vlaneseq }
  0x5a   :  { %797 = vset.pattern.permute.xlu1 %v983_v0  ;;  %795 = vset.pattern.permute.xlu0 %v984_v1  ;;  %v804_v4 = vld [vmem:[#allocation5] sm:$0xff]   ;;  %v805_v5 = vld [vmem:[#allocation5 + $0x8] sm:$0xff]   ;;  %v986_v6 = vmov 3   ;;  %v987_v7 = vmov 1   ;;  %v806_v8 = vld [vmem:[#allocation5 + $0x10] sm:$0xff]   ;;  %v988_v9 = vmov 4  }
  0x5b   :  { %697 = vmatprep.subr.bf16.mxu0 %v985_v2  ;;  %717 = vmatprep.subr.bf16.mxu1 %v985_v2  ;;  %v989_v10 = vmov 5   ;;  %v807_v11 = vld [vmem:[#allocation5 + $0x18] sm:$0xff]   ;;  %v808_v12 = vld [vmem:[#allocation5 + $0x20] sm:$0xff]   ;;  %v990_v13 = vmov 6   ;;  %v991_v14 = vmov 7   ;;  %v809_v15 = vld [vmem:[#allocation5 + $0x28] sm:$0xff]  }
  0x5c   :  { %131 = vperm.xlu1 %797, %v97_v3   ;;  %117 = vperm.xlu0 %795, %v97_v3   ;;  %v810_v16 = vld [vmem:[#allocation5 + $0x30] sm:$0xff]   ;;  %vm992_vm0 = vmmov 0   ;;  %v812_v17 = vld [vmem:[#allocation7] sm:$0xff]   ;;  %v811_v18 = vld [vmem:[#allocation5 + $0x38] sm:$0xff]   ;;  %v115_v28 = vand.u32 127, %v114_v25  ;;  %s993_s24 = smov [#allocation11]  }
  0x5d   :  { %698 = vmatpush3.bf16.msra.mxu0 %v804_v4  ;;  %713 = vmatprep.mubr.msk.bf16.mxu0 %vm992_vm0, %v985_v2  ;;  %v813_v19 = vld [vmem:[#allocation7 + $0x8] sm:$0xff]   ;;  %v814_v20 = vld [vmem:[#allocation7 + $0x10] sm:$0xff]   ;;  %v815_v21 = vld [vmem:[#allocation7 + $0x18] sm:$0xff]   ;;  %s607_s25 = sshll.u32 %s993_s24, 4  ;;  %s608_s25 = int_to_ptr.vmem [resolvable:$true] %s607_s25 }
  0x5e   :  { %699 = vmatprep.subr.bf16.mxu0 %v985_v2  ;;  %733 = vmatprep.mubr.msk.bf16.mxu1 %vm992_vm0, %v985_v2  ;;  %v816_v22 = vld [vmem:[#allocation7 + $0x20] sm:$0xff]   ;;  %v817_v23 = vld [vmem:[#allocation7 + $0x28] sm:$0xff]   ;;  %v818_v24 = vld [vmem:[#allocation7 + $0x30] sm:$0xff]   ;;  %p951_p13 = scmp.lt.s32.totalorder %s608_s25, %s608_s25 }
  0x5f   :  { %718 = vmatpush3.bf16.msra.mxu1 %v812_v17  ;;  %v819_v51 = vld [vmem:[#allocation7 + $0x38] sm:$0xff]   ;;  %v820_v52 = vld [vmem:[#allocation8] sm:$0xff]   ;;  %v821_v53 = vld [vmem:[#allocation8 + $0x8] sm:$0xff]  }
  0x60   :  { %798 = vset.pattern.permute.xlu1 %v986_v6  ;;  %796 = vset.pattern.permute.xlu0 %v987_v7  ;;  %v822_v54 = vld [vmem:[#allocation8 + $0x10] sm:$0xff]   ;;  %v823_v55 = vld [vmem:[#allocation8 + $0x18] sm:$0xff]   ;;  %v824_v56 = vld [vmem:[#allocation8 + $0x20] sm:$0xff]  }
  0x61   :  { %138 = vperm.xlu1 %798, %v97_v3   ;;  %124 = vperm.xlu0 %796, %v97_v3   ;;  %v825_v57 = vld [vmem:[#allocation8 + $0x28] sm:$0xff]   ;;  %v826_v0 = vld [vmem:[#allocation8 + $0x30] sm:$0xff]   ;;  %v827_v1 = vld [vmem:[#allocation8 + $0x38] sm:$0xff]  }
  0x62   :  { %700 = vmatpush3.bf16.msra.mxu0 %v805_v5  ;;  %719 = vmatprep.subr.bf16.mxu1 %v985_v2  ;;  %v829_v4 = vld [vmem:[#allocation10 + $0x8] sm:$0xff]   ;;  %v830_v5 = vld [vmem:[#allocation10 + $0x10] sm:$0xff]   ;;  %v831_v6 = vld [vmem:[#allocation10 + $0x18] sm:$0xff]  }
  0x63   :  { %701 = vmatprep.subr.bf16.mxu0 %v985_v2  ;;  %720 = vmatpush3.bf16.msra.mxu1 %v813_v19  ;;  %v832_v7 = vld [vmem:[#allocation10 + $0x20] sm:$0xff]   ;;  %v834_v17 = vld [vmem:[#allocation10 + $0x30] sm:$0xff]   ;;  %v643_v19 = vld [vmem:[%s1185_s5] ss:$0 sm:$0xff]  ;;  %s946_s5 = scalar_lea.vmem %s608_s25, 128 }
  0x64   :  { %721 = vmatprep.subr.bf16.mxu1 %v985_v2  ;;  %p947_p12 = scmp.ne.s32.totalorder %s608_s25, %s946_s5  ;;  %p952_p0 = scmp.lt.s32.totalorder %s946_s5, %s946_s5 }
  0x65   :  { %799 = vset.pattern.permute.xlu1 %v988_v9  ;;  %800 = vset.pattern.permute.xlu0 %v989_v10  ;;  %v634_v9 = vld [vmem:[%s1183_s3] ss:$0 sm:$0xff] }
  0x66   :  { %145 = vperm.xlu1 %799, %v97_v3   ;;  %152 = vperm.xlu0 %800, %v97_v3   ;;  %p953_p1 = por %p952_p0, %p951_p13 }
  0x67   :  { %702 = vmatpush3.bf16.msra.mxu0 %v806_v8  ;;  %722 = vmatpush3.bf16.msra.mxu1 %v814_v20  ;;  %v833_v8 = vld [vmem:[#allocation10 + $0x28] sm:$0xff]  }
  0x68   :  { %703 = vmatprep.subr.bf16.mxu0 %v985_v2  ;;  %723 = vmatprep.subr.bf16.mxu1 %v985_v2  ;;  %p954_p2 = pnand %p953_p1, %p947_p12 }
  0x6a   :  { %801 = vset.pattern.permute.xlu1 %v990_v13  ;;  %803 = vset.pattern.permute.xlu0 %v991_v14 }
  0x6b   :  { %159 = vperm.xlu1 %801, %v97_v3   ;;  %704 = vmatpush3.bf16.msra.mxu0 %v807_v11 }
  0x6c   :  { %705 = vmatprep.subr.bf16.mxu0 %v985_v2  ;;  %724 = vmatpush3.bf16.msra.mxu1 %v815_v21 }
  0x6d   :  { %725 = vmatprep.subr.bf16.mxu1 %v985_v2 }
  0x6f   :  { %802 = vset.pattern.permute.xlu1 %v991_v14  ;;  %706 = vmatpush3.bf16.msra.mxu0 %v808_v12 }
  0x70   :  { %166 = vperm.xlu1 %802, %v97_v3   ;;  %707 = vmatprep.subr.bf16.mxu0 %v985_v2  ;;  %v828_v3 = vld [vmem:[#allocation10] sm:$0xff]  }
  0x71   :  { %726 = vmatpush3.bf16.msra.mxu1 %v816_v22 }
  0x72   :  { %727 = vmatprep.subr.bf16.mxu1 %v985_v2 }
  0x73   :  { %708 = vmatpush3.bf16.msra.mxu0 %v809_v15 }
  0x74   :  { %709 = vmatprep.subr.bf16.mxu0 %v985_v2 }
  0x75   :  { %728 = vmatpush3.bf16.msra.mxu1 %v817_v23 }
  0x76   :  { %729 = vmatprep.subr.bf16.mxu1 %v985_v2 }
  0x77   :  { %710 = vmatpush3.bf16.msra.mxu0 %v810_v16 }
  0x78   :  { %711 = vmatprep.subr.bf16.mxu0 %v985_v2 }
  0x79   :  { %730 = vmatpush3.bf16.msra.mxu1 %v818_v24 }
  0x7a   :  { %731 = vmatprep.subr.bf16.mxu1 %v985_v2 }
  0x7b   :  { %712 = vmatpush3.bf16.msra.mxu0 %v811_v18  ;;  %v835_v18 = vld [vmem:[#allocation10 + $0x38] sm:$0xff]  }
  0x7c   :  { %737 = vmatprep.subr.bf16.mxu0 %v985_v2 }
  0x7d   :  { %732 = vmatpush3.bf16.msra.mxu1 %v819_v51 }
  0x7e   :  { %757 = vmatprep.subr.bf16.mxu1 %v985_v2 }
  0xdb   :  { %v132_v26 = vpop.permute.xlu1 %131  ;;  %v118_v27 = vpop.permute.xlu0 %117 }
  0xdc   :  { %vm119_vm1 = vcmp.eq.s32.totalorder %v115_v28, %v118_v27  ;;  %vm133_vm2 = vcmp.eq.s32.totalorder %v115_v28, %v132_v26  ;;  %v652_v27 = vld [vmem:[%s1187_s7] ss:$0 sm:$0xff] }
  0xdd   :  { %v618_v31 = vsel %vm119_vm1, 1.0, %v985_v2  ;;  %v620_v34 = vsel %vm133_vm2, 1.0, %v985_v2 }
  0xe0   :  { %v139_v29 = vpop.permute.xlu1 %138  ;;  %v125_v30 = vpop.permute.xlu0 %124 }
  0xe1   :  { %vm126_vm3 = vcmp.eq.s32.totalorder %v115_v28, %v125_v30  ;;  %vm140_vm4 = vcmp.eq.s32.totalorder %v115_v28, %v139_v29 }
  0xe2   :  { %v619_v32 = vsel %vm126_vm3, 1.0, %v985_v2  ;;  %v621_v38 = vsel %vm140_vm4, 1.0, %v985_v2 }
  0xe3   :  { %v129_v33 = vadd.f32 %v619_v32, %v618_v31 }
  0xe5   :  { %v136_v35 = vadd.f32 %v620_v34, %v129_v33  ;;  %v146_v36 = vpop.permute.xlu1 %145  ;;  %v153_v37 = vpop.permute.xlu0 %152 }
  0xe6   :  { %vm147_vm5 = vcmp.eq.s32.totalorder %v115_v28, %v146_v36  ;;  %vm154_vm6 = vcmp.eq.s32.totalorder %v115_v28, %v153_v37 }
  0xe7   :  { %v143_v39 = vadd.f32 %v621_v38, %v136_v35  ;;  %v622_v40 = vsel %vm147_vm5, 1.0, %v985_v2  ;;  %v623_v42 = vsel %vm154_vm6, 1.0, %v985_v2 }
  0xe9   :  { %v150_v41 = vadd.f32 %v622_v40, %v143_v39 }
  0xea   :  { %v160_v43 = vpop.permute.xlu1 %159 }
  0xeb   :  { %vm161_vm7 = vcmp.eq.s32.totalorder %v115_v28, %v160_v43  ;;  %v157_v44 = vadd.f32 %v623_v42, %v150_v41 }
  0xec   :  { %v624_v45 = vsel %vm161_vm7, 1.0, %v985_v2 }
  0xed   :  { %v164_v47 = vadd.f32 %v624_v45, %v157_v44 }
  0xef   :  { %v167_v46 = vpop.permute.xlu1 %166 }
  0xf0   :  { %vm168_vm8 = vcmp.eq.s32.totalorder %v115_v28, %v167_v46 }
  0xf1   :  { %v625_v48 = vsel %vm168_vm8, 1.0, %v985_v2 }
  0xf2   :  { %v171_v49 = vadd.f32 %v625_v48, %v164_v47 }
  0xf4   :  { %v172_v50 = vpack.c.bf16 %v171_v49, %v171_v49 }
  0xf6   :  { %714 = vmatmul.mubr.bf16.vlgmr.msra.gmra.mrb[0].mxu0 %v172_v50 }
  0xf7   :  { %753 = vmatprep.mubr.msk.bf16.mxu0 %vm992_vm0, %v985_v2  ;;  %738 = vmatpush3.bf16.msra.mxu0 %v820_v52 }
  0xf8   :  { %739 = vmatprep.subr.bf16.mxu0 %v985_v2 }
  0xfb   :  { %740 = vmatpush3.bf16.msra.mxu0 %v821_v53 }
  0xfc   :  { %741 = vmatprep.subr.bf16.mxu0 %v985_v2 }
  0xff   :  { %742 = vmatpush3.bf16.msra.mxu0 %v822_v54 }
 0x100   :  { %743 = vmatprep.subr.bf16.mxu0 %v985_v2 }
 0x103   :  { %744 = vmatpush3.bf16.msra.mxu0 %v823_v55 }
 0x104   :  { %745 = vmatprep.subr.bf16.mxu0 %v985_v2 }
 0x107   :  { %746 = vmatpush3.bf16.msra.mxu0 %v824_v56 }
 0x108   :  { %747 = vmatprep.subr.bf16.mxu0 %v985_v2 }
 0x10b   :  { %748 = vmatpush3.bf16.msra.mxu0 %v825_v57 }
 0x10c   :  { %749 = vmatprep.subr.bf16.mxu0 %v985_v2 }
 0x10f   :  { %750 = vmatpush3.bf16.msra.mxu0 %v826_v0 }
 0x110   :  { %751 = vmatprep.subr.bf16.mxu0 %v985_v2 }
 0x113   :  { %752 = vmatpush3.bf16.msra.mxu0 %v827_v1 }
 0x1c9   :  { %v255_v58 = vpop.f32.mrb[0].mxu0 }
 0x1ca   :  { %v261_v59 = vmul.f32 0.125, %v255_v58  ;;  %v715_v60 = vpop.f32.mrb[1].mxu0 }
 0x1cb   :  { %v258_v61 = vpop.f32.mrb[2].mxu0 }
 0x1cc   :  { %v279_v62 = vpack.c.bf16 %v261_v59, %v261_v59  ;;  %v716_v63 = vpop.f32.mrb[3].mxu0 }
 0x1ce   :  { %734 = vmatmul.mubr.bf16.vlgmr.msra.gmra.mrb[0].mxu1 %v279_v62 }
 0x1cf   :  { %773 = vmatprep.mubr.msk.bf16.mxu1 %vm992_vm0, %v985_v2  ;;  %758 = vmatpush3.bf16.msra.mxu1 %v828_v3 }
 0x1d0   :  { %759 = vmatprep.subr.bf16.mxu1 %v985_v2 }
 0x1d3   :  { %760 = vmatpush3.bf16.msra.mxu1 %v829_v4 }
 0x1d4   :  { %761 = vmatprep.subr.bf16.mxu1 %v985_v2 }
 0x1d7   :  { %762 = vmatpush3.bf16.msra.mxu1 %v830_v5 }
 0x1d8   :  { %763 = vmatprep.subr.bf16.mxu1 %v985_v2 }
 0x1db   :  { %764 = vmatpush3.bf16.msra.mxu1 %v831_v6 }
 0x1dc   :  { %765 = vmatprep.subr.bf16.mxu1 %v985_v2 }
 0x1df   :  { %766 = vmatpush3.bf16.msra.mxu1 %v832_v7 }
 0x1e0   :  { %767 = vmatprep.subr.bf16.mxu1 %v985_v2 }
 0x1e3   :  { %768 = vmatpush3.bf16.msra.mxu1 %v833_v8 }
 0x1e4   :  { %769 = vmatprep.subr.bf16.mxu1 %v985_v2 }
 0x1e7   :  { %770 = vmatpush3.bf16.msra.mxu1 %v834_v17 }
 0x1e8   :  { %771 = vmatprep.subr.bf16.mxu1 %v985_v2 }
 0x1eb   :  { %772 = vmatpush3.bf16.msra.mxu1 %v835_v18 }
 0x2a1   :  { %v368_v10 = vpop.f32.mrb[0].mxu1 }
 0x2a2   :  { %v369_v11 = vadd.f32 %v634_v9, %v368_v10  ;;  %v735_v12 = vpop.f32.mrb[1].mxu1 }
 0x2a3   :  { %v371_v13 = vpop.f32.mrb[2].mxu1 }
 0x2a4   :  { %v374_v14 = vmax.f32 %v369_v11, 0.0  ;;  %v736_v15 = vpop.f32.mrb[3].mxu1 }
 0x2a6   :  { %v392_v16 = vpack.c.bf16 %v374_v14, %v374_v14 }
 0x2a8   :  { %754 = vmatmul.mubr.bf16.vlgmr.msra.gmra.mrb[4].mxu0 %v392_v16 }
 0x37b   :  { %v481_v20 = vpop.f32.mrb[4].mxu0 }
 0x37c   :  { %v482_v21 = vadd.f32 %v643_v19, %v481_v20  ;;  %v755_v22 = vpop.f32.mrb[5].mxu0 }
 0x37d   :  { %v484_v23 = vpop.f32.mrb[6].mxu0 }
 0x37e   :  { %v487_v24 = vmax.f32 %v482_v21, 0.0  ;;  %v756_v25 = vpop.f32.mrb[7].mxu0 }
 0x380   :  { %v505_v26 = vpack.c.bf16 %v487_v24, %v487_v24 }
 0x382   :  { %774 = vmatmul.mubr.bf16.vlgmr.msra.gmra.mrb[4].mxu1 %v505_v26 }
 0x455   :  { %v594_v2 = vpop.f32.mrb[4].mxu1 }
 0x456   :  { %v595_v28 = vadd.f32 %v652_v27, %v594_v2  ;;  %v775_v29 = vpop.f32.mrb[5].mxu1 }
 0x457   :  { %v597_v30 = vpop.f32.mrb[6].mxu1 }
 0x458   :  { %600 = vst [vmem:[#allocation11] sm:$0xff] %v595_v28  ;;  %v776_v31 = vpop.f32.mrb[7].mxu1 }
 0x459   :  { %957 = shalt.err (!%p954_p2)
}
 0x45a   :  { %s958_s7 = scalar_lea.hbm %s1188_s8, 128 }
 0x45b   :  { %p959_p3 = scmp.ne.s32.totalorder %s1188_s8, %s958_s7  ;;  %p962_p4 = scmp.lt.u32.totalorder %s958_s7, %s1188_s8 }
 0x45d   :  { %p964_p5 = pnand %p962_p4, %p959_p3 }
 0x45f   :  { %967 = shalt.err (!%p964_p5)
}
 0x460   :  { %610 = dma.vmem_to_hbm [thread:$0]  %s608_s25, 128, %s1188_s8, [#allocation4]  }
 0x461   :  { %974 = dma.done.wait [#allocation4], 128  }
 0x462   :  { %975 = vsyncadd [#allocation4], 4294967168 }
 0x463   :  { %614 = vsyncpa [#allocation3], 1 }
 0x464   :  { %615 = vsyncpa [#allocation6], 1 }
 0x465   :  { %616 = vsyncpa [#allocation9], 1 }
 0x466   :  { %617 = vsyncpa [#allocation4], 1 }

</bundles_post_ra>
